<compile_context>
chip_gen: v5e
topology: v5e:2x2
jax: 0.10.0
libtpu: 0.0.40
codegen_flags: <defaults>
</compile_context>

<pallas_src>
import jax
import jax.numpy as jnp
from jax.experimental import pallas as pl
from jax.experimental.pallas import tpu as pltpu


def _add_kernel(img_ref, noise_ref, out_ref):
    # One VMEM tile of the image plus the matching noise tile.
    out_ref[...] = img_ref[...] + noise_ref[...]


def _pick_row_tile(rows: int, row_bytes: int,
                   *, target_tile_bytes: int = 2 << 20, min_blocks: int = 2) -> int:
    """Pick a row-tile size: ~target_tile_bytes per operand tile, >= min_blocks
    grid steps (so v7x megacore has something to shard), sublane-aligned."""
    tr = max(1, target_tile_bytes // max(1, row_bytes))
    tr = min(tr, pl.cdiv(rows, min_blocks))
    if tr >= rows:
        return rows                      # single full-extent block
    tr = max(8, (tr // 8) * 8)           # sublane (8) alignment
    return min(tr, rows)


def ddpm_forward(image: jax.Array, noise: jax.Array) -> jax.Array:
    """DDPM.forward() == ForwardProcess.forward() == image + noise."""
    assert image.shape == noise.shape and image.dtype == noise.dtype
    n, c, h, w = image.shape

    # Flatten NCHW -> (N*C*H, W): lane-dense last dim, row-major everything else.
    rows = n * c * h
    img2d = image.reshape(rows, w)
    noise2d = noise.reshape(rows, w)

    row_bytes = w * image.dtype.itemsize
    tr = _pick_row_tile(rows, row_bytes)
    grid = (pl.cdiv(rows, tr),)

    out2d = pl.pallas_call(
        _add_kernel,
        out_shape=jax.ShapeDtypeStruct((rows, w), image.dtype),
        grid_spec=pltpu.PrefetchScalarGridSpec(
            num_scalar_prefetch=0,
            grid=grid,
            in_specs=[
                pl.BlockSpec((tr, w), lambda i: (i, 0)),   # full-width row slab
                pl.BlockSpec((tr, w), lambda i: (i, 0)),
            ],
            out_specs=pl.BlockSpec((tr, w), lambda i: (i, 0)),
        ),
        # Reuse the image buffer for the output (same shape/dtype, elementwise).
        input_output_aliases={0: 0},
        compiler_params=pltpu.CompilerParams(
            dimension_semantics=("parallel",),
            vmem_limit_bytes=64 << 20,
        ),
    )(img2d, noise2d)

    return out2d.reshape(n, c, h, w)


if __name__ == "__main__":
    # Deterministic "parameters": the module's __init__ holds a fixed image
    # (randn(1, 3, 256, 256)) and a fixed noise tensor of the same shape.
    key = jax.random.PRNGKey(0)
    k_img, k_noise = jax.random.split(key)
    image = jax.random.normal(k_img, (1, 3, 256, 256), dtype=jnp.float32)
    noise = jax.random.normal(k_noise, (1, 3, 256, 256), dtype=jnp.float32)

    # Reference computed first (the aliased output may reuse the image buffer
    # when the kernel runs inside a donated/jit region).
    ref = image + noise

    out = jax.jit(ddpm_forward)(image, noise)
    out = jax.block_until_ready(out)

    assert out.shape == (1, 3, 256, 256)
    assert jnp.allclose(out, ref, atol=1e-6), "mismatch vs reference"

    print("KERNEL_OK")
</pallas_src>

<mosaic_0001>
module attributes {stable_mosaic.version = 11 : i64} {
  func.func @_add_kernel(%arg0: i32, %arg1: memref<384x256xf32, #tpu.memory_space<vmem>>, %arg2: memref<384x256xf32, #tpu.memory_space<vmem>>, %arg3: memref<384x256xf32, #tpu.memory_space<vmem>>) attributes {dimension_semantics = [#tpu.dimension_semantics<parallel>], iteration_bounds = array<i64: 2>, scalar_prefetch = 0 : i64, scratch_operands = 0 : i64, tpu.core_type = #tpu.core_type<tc>, window_params = [{transform_indices = @transform_0, window_bounds = array<i64: 384, 256>}, {transform_indices = @transform_1, window_bounds = array<i64: 384, 256>}, {transform_indices = @transform_2, window_bounds = array<i64: 384, 256>}]} {
    %c0 = arith.constant 0 : index
    %c0_0 = arith.constant 0 : index
    %0 = vector.load %arg1[%c0, %c0_0] : memref<384x256xf32, #tpu.memory_space<vmem>>, vector<384x256xf32>
    %c0_1 = arith.constant 0 : index
    %c0_2 = arith.constant 0 : index
    %1 = vector.load %arg2[%c0_1, %c0_2] : memref<384x256xf32, #tpu.memory_space<vmem>>, vector<384x256xf32>
    %2 = arith.addf %0, %1 : vector<384x256xf32>
    %c0_3 = arith.constant 0 : index
    %c0_4 = arith.constant 0 : index
    %3 = vector.load %arg3[%c0_3, %c0_4] : memref<384x256xf32, #tpu.memory_space<vmem>>, vector<384x256xf32>
    tpu.vector_store %arg3[%c0_3, %c0_4], %2 {strides = array<i32>} : memref<384x256xf32, #tpu.memory_space<vmem>>, vector<384x256xf32>,
    return
  }
  func.func @transform_0(%arg0: i32) -> (i32, i32) {
    %c0_i32 = arith.constant 0 : i32
    %c0_i32_0 = arith.constant 0 : i32
    return %arg0, %c0_i32 : i32, i32
  }
  func.func @transform_1(%arg0: i32) -> (i32, i32) {
    %c0_i32 = arith.constant 0 : i32
    %c0_i32_0 = arith.constant 0 : i32
    return %arg0, %c0_i32 : i32, i32
  }
  func.func @transform_2(%arg0: i32) -> (i32, i32) {
    %c0_i32 = arith.constant 0 : i32
    %c0_i32_0 = arith.constant 0 : i32
    return %arg0, %c0_i32 : i32, i32
  }
}

</mosaic_0001>

<bundles_post_ra>
// kernel: ddpm_forward.1
= control target key start
LH: loop header
LB: loop body
LE: loop exit
PB: predicated region body
PF: predicated region fallthrough
CT: control target
= control target key end

     0   :  { %s678_s9 = smov 0   ;;  %s1280_s0 = inlined_call_operand.vmem [shape: f32[768,256], index: 0, kind: input, shape index: {}, may-alias: {0,2}]   ;;  %s1281_s1 = inlined_call_operand.vmem [shape: f32[768,256], index: 1, kind: input, shape index: {}]   ;;  %s1282_s2 = inlined_call_operand.vmem [shape: f32[768,256], index: 2, kind: output, shape index: {}, may-alias: {0,2}]  }
   0x1 LB: > { %s631_s10 = sadd.s32 4294967295, %s661_s9   ;;  %p635_p0 = scmp.ge.s32.totalorder %s661_s9, 1  ;;  %s661_s9 = sphi %s678_s9, %s12_s9  }
   0x2   : > { %p126_p1 = scmp.lt.s32.totalorder %s661_s9, 3 }
   0x4   : > { %p127_p2 = pnand %p635_p0, %p126_p1 }
   0x6   : > { %130 = sbr.rel (%p127_p2) target bundleno = 174 (0xae), region = 28 }
   0xb   : > { %s156_s11 = smul.u32 48, %s631_s10 }
   0xd   : > { %p157_p3 = scmp.lt.s32.totalorder %s156_s11, 95 }
   0xf   : > { %s1368_s11 = smov (!%p157_p3, %s156_s11), 95 }
  0x10   : > { %s644_s12 = sshll.u32 %s1368_s11, 4 }
  0x11   : > { %s689_s15 = scalar_lea.vmem %s1280_s0, %s644_s12  ;;  %s694_s18 = scalar_lea.vmem %s1281_s1, %s644_s12 }
  0x12   : > { %v697_v0 = vld [vmem:[%s689_s15] sm:$0xff]  ;;  %v700_v1 = vld [vmem:[%s689_s15 + $0x8] sm:$0xff]  ;;  %v703_v2 = vld [vmem:[%s689_s15 + $0x10] sm:$0xff]  ;;  %s717_s21 = scalar_lea.vmem %s1282_s2, %s644_s12 }
  0x13   : > { %v706_v3 = vld [vmem:[%s689_s15 + $0x18] sm:$0xff]  ;;  %v709_v4 = vld [vmem:[%s689_s15 + $0x20] sm:$0xff]  ;;  %v712_v5 = vld [vmem:[%s689_s15 + $0x28] sm:$0xff] }
  0x14   : > { %v720_v6 = vld [vmem:[%s689_s15 + $0x30] sm:$0xff]  ;;  %v723_v7 = vld [vmem:[%s689_s15 + $0x38] sm:$0xff]  ;;  %v726_v8 = vld [vmem:[%s689_s15 + $0x40] sm:$0xff] }
  0x15   : > { %v729_v9 = vld [vmem:[%s689_s15 + $0x48] sm:$0xff]  ;;  %v732_v10 = vld [vmem:[%s689_s15 + $0x50] sm:$0xff]  ;;  %v735_v11 = vld [vmem:[%s689_s15 + $0x58] sm:$0xff] }
  0x16   : > { %v738_v12 = vld [vmem:[%s689_s15 + $0x60] sm:$0xff]  ;;  %v741_v13 = vld [vmem:[%s689_s15 + $0x68] sm:$0xff]  ;;  %v744_v14 = vld [vmem:[%s689_s15 + $0x70] sm:$0xff] }
  0x17   : > { %v747_v15 = vld [vmem:[%s689_s15 + $0x78] sm:$0xff]  ;;  %v750_v16 = vld [vmem:[%s689_s15 + $0x80] sm:$0xff]  ;;  %v753_v17 = vld [vmem:[%s689_s15 + $0x88] sm:$0xff] }
  0x18   : > { %v756_v18 = vld [vmem:[%s689_s15 + $0x90] sm:$0xff]  ;;  %v759_v19 = vld [vmem:[%s689_s15 + $0x98] sm:$0xff]  ;;  %v762_v20 = vld [vmem:[%s689_s15 + $0xa0] sm:$0xff] }
  0x19   : > { %v765_v21 = vld [vmem:[%s689_s15 + $0xa8] sm:$0xff]  ;;  %v768_v22 = vld [vmem:[%s689_s15 + $0xb0] sm:$0xff]  ;;  %v771_v23 = vld [vmem:[%s689_s15 + $0xb8] sm:$0xff] }
  0x1a   : > { %v774_v24 = vld [vmem:[%s689_s15 + $0xc0] sm:$0xff]  ;;  %v777_v25 = vld [vmem:[%s689_s15 + $0xc8] sm:$0xff]  ;;  %v780_v26 = vld [vmem:[%s689_s15 + $0xd0] sm:$0xff] }
  0x1b   : > { %v783_v27 = vld [vmem:[%s689_s15 + $0xd8] sm:$0xff]  ;;  %v786_v28 = vld [vmem:[%s689_s15 + $0xe0] sm:$0xff]  ;;  %v789_v29 = vld [vmem:[%s689_s15 + $0xe8] sm:$0xff] }
  0x1c   : > { %v792_v30 = vld [vmem:[%s689_s15 + $0xf0] sm:$0xff]  ;;  %v795_v31 = vld [vmem:[%s689_s15 + $0xf8] sm:$0xff]  ;;  %v798_v32 = vld [vmem:[%s689_s15 + $0x100] sm:$0xff] }
  0x1d   : > { %v801_v33 = vld [vmem:[%s689_s15 + $0x108] sm:$0xff]  ;;  %v804_v34 = vld [vmem:[%s689_s15 + $0x110] sm:$0xff]  ;;  %v807_v35 = vld [vmem:[%s689_s15 + $0x118] sm:$0xff] }
  0x1e   : > { %v810_v36 = vld [vmem:[%s689_s15 + $0x120] sm:$0xff]  ;;  %v813_v37 = vld [vmem:[%s689_s15 + $0x128] sm:$0xff]  ;;  %v816_v38 = vld [vmem:[%s689_s15 + $0x130] sm:$0xff] }
  0x1f   : > { %v819_v39 = vld [vmem:[%s689_s15 + $0x138] sm:$0xff]  ;;  %v822_v40 = vld [vmem:[%s689_s15 + $0x140] sm:$0xff]  ;;  %v825_v41 = vld [vmem:[%s689_s15 + $0x148] sm:$0xff] }
  0x20   : > { %v828_v42 = vld [vmem:[%s689_s15 + $0x150] sm:$0xff]  ;;  %v831_v43 = vld [vmem:[%s689_s15 + $0x158] sm:$0xff]  ;;  %v834_v44 = vld [vmem:[%s689_s15 + $0x160] sm:$0xff] }
  0x21   : > { %v837_v45 = vld [vmem:[%s689_s15 + $0x168] sm:$0xff]  ;;  %v840_v46 = vld [vmem:[%s689_s15 + $0x170] sm:$0xff]  ;;  %v843_v47 = vld [vmem:[%s689_s15 + $0x178] sm:$0xff] }
  0x22   : > { %v846_v48 = vld [vmem:[%s689_s15 + $0x180] sm:$0xff]  ;;  %v849_v49 = vld [vmem:[%s689_s15 + $0x188] sm:$0xff]  ;;  %v852_v50 = vld [vmem:[%s689_s15 + $0x190] sm:$0xff] }
  0x23   : > { %v855_v51 = vld [vmem:[%s689_s15 + $0x198] sm:$0xff]  ;;  %v858_v52 = vld [vmem:[%s689_s15 + $0x1a0] sm:$0xff]  ;;  %v861_v53 = vld [vmem:[%s689_s15 + $0x1a8] sm:$0xff] }
  0x24   : > { %1283 = vst [vmem:[#allocation2_spill] sm:$0xff] %v858_v52  ;;  %v864_v54 = vld [vmem:[%s689_s15 + $0x1b0] sm:$0xff]  ;;  %v867_v55 = vld [vmem:[%s689_s15 + $0x1b8] sm:$0xff]  ;;  %v870_v56 = vld [vmem:[%s689_s15 + $0x1c0] sm:$0xff] }
  0x25   : > { %1284 = vst [vmem:[#allocation3_spill] sm:$0xff] %v861_v53  ;;  %v873_v57 = vld [vmem:[%s689_s15 + $0x1c8] sm:$0xff]  ;;  %v876_v58 = vld [vmem:[%s689_s15 + $0x1d0] sm:$0xff]  ;;  %v879_v59 = vld [vmem:[%s689_s15 + $0x1d8] sm:$0xff] }
  0x26   : > { %1285 = vst [vmem:[#allocation4_spill] sm:$0xff] %v864_v54  ;;  %v882_v60 = vld [vmem:[%s689_s15 + $0x1e0] sm:$0xff]  ;;  %v885_v61 = vld [vmem:[%s689_s15 + $0x1e8] sm:$0xff]  ;;  %v888_v62 = vld [vmem:[%s689_s15 + $0x1f0] sm:$0xff] }
  0x27   : > { %1286 = vst [vmem:[#allocation5_spill] sm:$0xff] %v867_v55  ;;  %v891_v63 = vld [vmem:[%s689_s15 + $0x1f8] sm:$0xff]  ;;  %v275_v55 = vld [vmem:[%s694_s18 + $0x10] sm:$0xff]  ;;  %v277_v54 = vld [vmem:[%s694_s18 + $0x20] sm:$0xff] }
  0x28   : > { %1287 = vst [vmem:[#allocation6_spill] sm:$0xff] %v870_v56  ;;  %v948_v56 = vld [vmem:[%s689_s15 + $0x290] sm:$0xff]  ;;  %v996_v53 = vld [vmem:[%s689_s15 + $0x2f8] sm:$0xff] }
  0x29   : > { %1288 = vst [vmem:[#allocation7_spill] sm:$0xff] %v873_v57  ;;  %v894_v57 = vld [vmem:[%s689_s15 + $0x200] sm:$0xff] }
  0x2a   : > { %1289 = vst [vmem:[#allocation8_spill] sm:$0xff] %v876_v58  ;;  %v897_v58 = vld [vmem:[%s689_s15 + $0x208] sm:$0xff] }
  0x2b   : > { %1290 = vst [vmem:[#allocation9_spill] sm:$0xff] %v879_v59  ;;  %v900_v59 = vld [vmem:[%s689_s15 + $0x210] sm:$0xff] }
  0x2c   : > { %1291 = vst [vmem:[#allocation10_spill] sm:$0xff] %v882_v60  ;;  %v903_v60 = vld [vmem:[%s689_s15 + $0x218] sm:$0xff] }
  0x2d   : > { %1292 = vst [vmem:[#allocation11_spill] sm:$0xff] %v885_v61  ;;  %v906_v61 = vld [vmem:[%s689_s15 + $0x220] sm:$0xff] }
  0x2e   : > { %1293 = vst [vmem:[#allocation12_spill] sm:$0xff] %v888_v62  ;;  %v909_v62 = vld [vmem:[%s689_s15 + $0x228] sm:$0xff] }
  0x2f   : > { %1294 = vst [vmem:[#allocation13_spill] sm:$0xff] %v891_v63  ;;  %v912_v63 = vld [vmem:[%s689_s15 + $0x230] sm:$0xff] }
  0x30   : > { %1295 = vst [vmem:[#allocation14_spill] sm:$0xff] %v894_v57  ;;  %v915_v57 = vld [vmem:[%s689_s15 + $0x238] sm:$0xff] }
  0x31   : > { %1296 = vst [vmem:[#allocation15_spill] sm:$0xff] %v897_v58  ;;  %v918_v58 = vld [vmem:[%s689_s15 + $0x240] sm:$0xff] }
  0x32   : > { %1297 = vst [vmem:[#allocation16_spill] sm:$0xff] %v900_v59  ;;  %v921_v59 = vld [vmem:[%s689_s15 + $0x248] sm:$0xff] }
  0x33   : > { %1298 = vst [vmem:[#allocation17_spill] sm:$0xff] %v903_v60  ;;  %v924_v60 = vld [vmem:[%s689_s15 + $0x250] sm:$0xff] }
  0x34   : > { %1299 = vst [vmem:[#allocation18_spill] sm:$0xff] %v906_v61  ;;  %v927_v61 = vld [vmem:[%s689_s15 + $0x258] sm:$0xff] }
  0x35   : > { %1300 = vst [vmem:[#allocation19_spill] sm:$0xff] %v909_v62  ;;  %v930_v62 = vld [vmem:[%s689_s15 + $0x260] sm:$0xff] }
  0x36   : > { %1301 = vst [vmem:[#allocation20_spill] sm:$0xff] %v912_v63  ;;  %v933_v63 = vld [vmem:[%s689_s15 + $0x268] sm:$0xff] }
  0x37   : > { %1302 = vst [vmem:[#allocation21_spill] sm:$0xff] %v915_v57  ;;  %v936_v57 = vld [vmem:[%s689_s15 + $0x270] sm:$0xff] }
  0x38   : > { %1303 = vst [vmem:[#allocation22_spill] sm:$0xff] %v918_v58  ;;  %v939_v58 = vld [vmem:[%s689_s15 + $0x278] sm:$0xff] }
  0x39   : > { %1304 = vst [vmem:[#allocation23_spill] sm:$0xff] %v921_v59  ;;  %v942_v59 = vld [vmem:[%s689_s15 + $0x280] sm:$0xff] }
  0x3a   : > { %1305 = vst [vmem:[#allocation24_spill] sm:$0xff] %v924_v60  ;;  %v945_v60 = vld [vmem:[%s689_s15 + $0x288] sm:$0xff] }
  0x3b   : > { %1306 = vst [vmem:[#allocation25_spill] sm:$0xff] %v927_v61  ;;  %v951_v61 = vld [vmem:[%s689_s15 + $0x298] sm:$0xff] }
  0x3c   : > { %1307 = vst [vmem:[#allocation26_spill] sm:$0xff] %v930_v62  ;;  %v954_v62 = vld [vmem:[%s689_s15 + $0x2a0] sm:$0xff] }
  0x3d   : > { %1308 = vst [vmem:[#allocation27_spill] sm:$0xff] %v933_v63  ;;  %v957_v63 = vld [vmem:[%s689_s15 + $0x2a8] sm:$0xff] }
  0x3e   : > { %1309 = vst [vmem:[#allocation28_spill] sm:$0xff] %v936_v57  ;;  %v960_v57 = vld [vmem:[%s689_s15 + $0x2b0] sm:$0xff] }
  0x3f   : > { %1310 = vst [vmem:[#allocation29_spill] sm:$0xff] %v939_v58  ;;  %v963_v58 = vld [vmem:[%s689_s15 + $0x2b8] sm:$0xff] }
  0x40   : > { %1311 = vst [vmem:[#allocation30_spill] sm:$0xff] %v942_v59  ;;  %v966_v59 = vld [vmem:[%s689_s15 + $0x2c0] sm:$0xff] }
  0x41   : > { %1312 = vst [vmem:[#allocation31_spill] sm:$0xff] %v945_v60  ;;  %v969_v60 = vld [vmem:[%s689_s15 + $0x2c8] sm:$0xff] }
  0x42   : > { %1313 = vst [vmem:[#allocation32_spill] sm:$0xff] %v948_v56  ;;  %v972_v56 = vld [vmem:[%s689_s15 + $0x2d0] sm:$0xff] }
  0x43   : > { %1314 = vst [vmem:[#allocation33_spill] sm:$0xff] %v951_v61  ;;  %v975_v61 = vld [vmem:[%s689_s15 + $0x2d8] sm:$0xff] }
  0x44   : > { %1315 = vst [vmem:[#allocation34_spill] sm:$0xff] %v954_v62  ;;  %v978_v62 = vld [vmem:[%s689_s15 + $0x2e0] sm:$0xff] }
  0x45   : > { %1316 = vst [vmem:[#allocation35_spill] sm:$0xff] %v957_v63  ;;  %v981_v63 = vld [vmem:[%s689_s15 + $0x2e8] sm:$0xff] }
  0x46   : > { %1317 = vst [vmem:[#allocation36_spill] sm:$0xff] %v960_v57  ;;  %v273_v57 = vld [vmem:[%s694_s18] sm:$0xff] }
  0x47   : > { %1318 = vst [vmem:[#allocation37_spill] sm:$0xff] %v963_v58  ;;  %v274_v58 = vld [vmem:[%s694_s18 + $0x8] sm:$0xff] }
  0x48   : > { %1319 = vst [vmem:[#allocation38_spill] sm:$0xff] %v966_v59  ;;  %v369_v59 = vadd.f32 %v273_v57, %v697_v0  ;;  %v279_v0 = vld [vmem:[%s694_s18 + $0x30] sm:$0xff]  ;;  %v281_v57 = vld [vmem:[%s694_s18 + $0x40] sm:$0xff] }
  0x49   : > { %1320 = vst [vmem:[#allocation39_spill] sm:$0xff] %v969_v60  ;;  %v370_v60 = vadd.f32 %v274_v58, %v700_v1  ;;  %v373_v1 = vadd.f32 %v277_v54, %v709_v4  ;;  %v375_v58 = vadd.f32 %v279_v0, %v720_v6  ;;  %v283_v4 = vld [vmem:[%s694_s18 + $0x50] sm:$0xff]  ;;  %v377_v54 = vadd.f32 %v281_v57, %v726_v8  ;;  %v285_v6 = vld [vmem:[%s694_s18 + $0x60] sm:$0xff] }
  0x4a   : > { %1321 = vst [vmem:[#allocation40_spill] sm:$0xff] %v972_v56  ;;  %v371_v56 = vadd.f32 %v275_v55, %v703_v2  ;;  %v280_v2 = vld [vmem:[%s694_s18 + $0x38] sm:$0xff]  ;;  %v287_v8 = vld [vmem:[%s694_s18 + $0x70] sm:$0xff] }
  0x4b   : > { %1322 = vst [vmem:[#allocation41_spill] sm:$0xff] %v975_v61  ;;  %v276_v61 = vld [vmem:[%s694_s18 + $0x18] sm:$0xff]  ;;  %v383_v0 = vadd.f32 %v287_v8, %v744_v14  ;;  %v293_v14 = vld [vmem:[%s694_s18 + $0xa0] sm:$0xff] }
  0x4c   : > { %1323 = vst [vmem:[#allocation42_spill] sm:$0xff] %v978_v62  ;;  %v278_v62 = vld [vmem:[%s694_s18 + $0x28] sm:$0xff]  ;;  %v372_v52 = vadd.f32 %v276_v61, %v706_v3  ;;  %v381_v61 = vadd.f32 %v285_v6, %v738_v12  ;;  %v291_v12 = vld [vmem:[%s694_s18 + $0x90] sm:$0xff] }
  0x4d   : > { %1324 = vst [vmem:[#allocation43_spill] sm:$0xff] %v981_v63  ;;  %v993_v63 = vld [vmem:[%s689_s15 + $0x2f0] sm:$0xff]  ;;  %v374_v55 = vadd.f32 %v278_v62, %v712_v5  ;;  %v282_v3 = vld [vmem:[%s694_s18 + $0x48] sm:$0xff]  ;;  %v284_v5 = vld [vmem:[%s694_s18 + $0x58] sm:$0xff]  ;;  %v387_v57 = vadd.f32 %v291_v12, %v756_v18 }
  0x4e   : > { %465 = vst [vmem:[%s717_s21] sm:$0xff] %v369_v59  ;;  %v376_v59 = vadd.f32 %v280_v2, %v723_v7  ;;  %v286_v7 = vld [vmem:[%s694_s18 + $0x68] sm:$0xff]  ;;  %v297_v18 = vld [vmem:[%s694_s18 + $0xc0] sm:$0xff] }
  0x4f   : > { %466 = vst [vmem:[%s717_s21 + $0x8] sm:$0xff] %v370_v60  ;;  %v380_v60 = vadd.f32 %v284_v5, %v735_v11  ;;  %v382_v62 = vadd.f32 %v286_v7, %v741_v13  ;;  %v290_v11 = vld [vmem:[%s694_s18 + $0x88] sm:$0xff]  ;;  %v292_v13 = vld [vmem:[%s694_s18 + $0x98] sm:$0xff]  ;;  %v393_v5 = vadd.f32 %v297_v18, %v774_v24  ;;  %v303_v24 = vld [vmem:[%s694_s18 + $0xf0] sm:$0xff] }
  0x50   : > { %467 = vst [vmem:[%s717_s21 + $0x10] sm:$0xff] %v371_v56  ;;  %v378_v56 = vadd.f32 %v282_v3, %v729_v9  ;;  %v288_v9 = vld [vmem:[%s694_s18 + $0x78] sm:$0xff]  ;;  %v389_v3 = vadd.f32 %v293_v14, %v762_v20  ;;  %v299_v20 = vld [vmem:[%s694_s18 + $0xd0] sm:$0xff]  ;;  %v399_v8 = vadd.f32 %v303_v24, %v792_v30  ;;  %v309_v30 = vld [vmem:[%s694_s18 + $0x120] sm:$0xff] }
  0x51   : > { %468 = vst [vmem:[%s717_s21 + $0x18] sm:$0xff] %v372_v52  ;;  %v379_v52 = vadd.f32 %v283_v4, %v732_v10  ;;  %v289_v10 = vld [vmem:[%s694_s18 + $0x80] sm:$0xff]  ;;  %v395_v6 = vadd.f32 %v299_v20, %v780_v26  ;;  %v1326_v20 = vld [vmem:[#allocation3_spill] sm:$0xff] }
  0x52   : > { %469 = vst [vmem:[%s717_s21 + $0x20] sm:$0xff] %v373_v1  ;;  %v384_v1 = vadd.f32 %v288_v9, %v747_v15  ;;  %v385_v2 = vadd.f32 %v289_v10, %v750_v16  ;;  %v294_v15 = vld [vmem:[%s694_s18 + $0xa8] sm:$0xff]  ;;  %v295_v16 = vld [vmem:[%s694_s18 + $0xb0] sm:$0xff]  ;;  %v305_v26 = vld [vmem:[%s694_s18 + $0x100] sm:$0xff] }
  0x53   : > { %470 = vst [vmem:[%s717_s21 + $0x28] sm:$0xff] %v374_v55  ;;  %v386_v55 = vadd.f32 %v290_v11, %v753_v17  ;;  %v296_v17 = vld [vmem:[%s694_s18 + $0xb8] sm:$0xff]  ;;  %v391_v4 = vadd.f32 %v295_v16, %v768_v22  ;;  %v301_v22 = vld [vmem:[%s694_s18 + $0xe0] sm:$0xff]  ;;  %v401_v9 = vadd.f32 %v305_v26, %v798_v32  ;;  %v311_v32 = vld [vmem:[%s694_s18 + $0x130] sm:$0xff]  ;;  %v405_v11 = vadd.f32 %v309_v30, %v810_v36 }
  0x54   : > { %471 = vst [vmem:[%s717_s21 + $0x30] sm:$0xff] %v375_v58  ;;  %v388_v58 = vadd.f32 %v292_v13, %v759_v19  ;;  %v298_v19 = vld [vmem:[%s694_s18 + $0xc8] sm:$0xff]  ;;  %v397_v7 = vadd.f32 %v301_v22, %v786_v28  ;;  %v307_v28 = vld [vmem:[%s694_s18 + $0x110] sm:$0xff]  ;;  %v407_v12 = vadd.f32 %v311_v32, %v816_v38  ;;  %v317_v38 = vld [vmem:[%s694_s18 + $0x160] sm:$0xff] }
  0x55   : > { %472 = vst [vmem:[%s717_s21 + $0x38] sm:$0xff] %v376_v59  ;;  %v390_v59 = vadd.f32 %v294_v15, %v765_v21  ;;  %v300_v21 = vld [vmem:[%s694_s18 + $0xd8] sm:$0xff]  ;;  %v403_v10 = vadd.f32 %v307_v28, %v804_v34  ;;  %v313_v34 = vld [vmem:[%s694_s18 + $0x140] sm:$0xff]  ;;  %v315_v36 = vld [vmem:[%s694_s18 + $0x150] sm:$0xff]  ;;  %v413_v15 = vadd.f32 %v317_v38, %v834_v44 }
  0x56   : > { %473 = vst [vmem:[%s717_s21 + $0x40] sm:$0xff] %v377_v54  ;;  %v392_v54 = vadd.f32 %v296_v17, %v771_v23  ;;  %v302_v23 = vld [vmem:[%s694_s18 + $0xe8] sm:$0xff]  ;;  %v409_v13 = vadd.f32 %v313_v34, %v822_v40  ;;  %v411_v14 = vadd.f32 %v315_v36, %v828_v42  ;;  %v319_v40 = vld [vmem:[%s694_s18 + $0x170] sm:$0xff]  ;;  %v321_v42 = vld [vmem:[%s694_s18 + $0x180] sm:$0xff] }
  0x57   : > { %474 = vst [vmem:[%s717_s21 + $0x48] sm:$0xff] %v378_v56  ;;  %v394_v56 = vadd.f32 %v298_v19, %v777_v25  ;;  %v304_v25 = vld [vmem:[%s694_s18 + $0xf8] sm:$0xff]  ;;  %v415_v16 = vadd.f32 %v319_v40, %v840_v46  ;;  %v323_v44 = vld [vmem:[%s694_s18 + $0x190] sm:$0xff]  ;;  %v417_v17 = vadd.f32 %v321_v42, %v846_v48  ;;  %v325_v46 = vld [vmem:[%s694_s18 + $0x1a0] sm:$0xff] }
  0x58   : > { %475 = vst [vmem:[%s717_s21 + $0x50] sm:$0xff] %v379_v52  ;;  %v396_v52 = vadd.f32 %v300_v21, %v783_v27  ;;  %v306_v27 = vld [vmem:[%s694_s18 + $0x108] sm:$0xff]  ;;  %v419_v18 = vadd.f32 %v323_v44, %v852_v50  ;;  %v327_v48 = vld [vmem:[%s694_s18 + $0x1b0] sm:$0xff]  ;;  %v1325_v19 = vld [vmem:[#allocation2_spill] sm:$0xff] }
  0x59   : > { %476 = vst [vmem:[%s717_s21 + $0x58] sm:$0xff] %v380_v60  ;;  %v398_v60 = vadd.f32 %v302_v23, %v789_v29  ;;  %v308_v29 = vld [vmem:[%s694_s18 + $0x118] sm:$0xff]  ;;  %v329_v50 = vld [vmem:[%s694_s18 + $0x1c0] sm:$0xff]  ;;  %v1327_v21 = vld [vmem:[#allocation4_spill] sm:$0xff] }
  0x5a   : > { %477 = vst [vmem:[%s717_s21 + $0x60] sm:$0xff] %v381_v61  ;;  %v400_v61 = vadd.f32 %v304_v25, %v795_v31  ;;  %v310_v31 = vld [vmem:[%s694_s18 + $0x128] sm:$0xff]  ;;  %v1328_v22 = vld [vmem:[#allocation5_spill] sm:$0xff]  ;;  %v331_v23 = vld [vmem:[%s694_s18 + $0x1d0] sm:$0xff] }
  0x5b   : > { %478 = vst [vmem:[%s717_s21 + $0x68] sm:$0xff] %v382_v62  ;;  %v402_v62 = vadd.f32 %v306_v27, %v801_v33  ;;  %v312_v33 = vld [vmem:[%s694_s18 + $0x138] sm:$0xff]  ;;  %v1330_v25 = vld [vmem:[#allocation7_spill] sm:$0xff]  ;;  %v333_v26 = vld [vmem:[%s694_s18 + $0x1e0] sm:$0xff] }
  0x5c   : > { %479 = vst [vmem:[%s717_s21 + $0x70] sm:$0xff] %v383_v0  ;;  %v404_v0 = vadd.f32 %v308_v29, %v807_v35  ;;  %v314_v35 = vld [vmem:[%s694_s18 + $0x148] sm:$0xff]  ;;  %v1332_v28 = vld [vmem:[#allocation9_spill] sm:$0xff]  ;;  %v335_v29 = vld [vmem:[%s694_s18 + $0x1f0] sm:$0xff] }
  0x5d   : > { %480 = vst [vmem:[%s717_s21 + $0x78] sm:$0xff] %v384_v1  ;;  %v406_v1 = vadd.f32 %v310_v31, %v813_v37  ;;  %v316_v37 = vld [vmem:[%s694_s18 + $0x158] sm:$0xff]  ;;  %v1334_v31 = vld [vmem:[#allocation11_spill] sm:$0xff]  ;;  %v337_v32 = vld [vmem:[%s694_s18 + $0x200] sm:$0xff] }
  0x5e   : > { %481 = vst [vmem:[%s717_s21 + $0x80] sm:$0xff] %v385_v2  ;;  %v408_v2 = vadd.f32 %v312_v33, %v819_v39  ;;  %v318_v39 = vld [vmem:[%s694_s18 + $0x168] sm:$0xff]  ;;  %v1336_v34 = vld [vmem:[#allocation13_spill] sm:$0xff]  ;;  %v341_v38 = vld [vmem:[%s694_s18 + $0x220] sm:$0xff] }
  0x5f   : > { %482 = vst [vmem:[%s717_s21 + $0x88] sm:$0xff] %v386_v55  ;;  %v410_v55 = vadd.f32 %v314_v35, %v825_v41  ;;  %v320_v41 = vld [vmem:[%s694_s18 + $0x178] sm:$0xff]  ;;  %v339_v35 = vld [vmem:[%s694_s18 + $0x210] sm:$0xff]  ;;  %v345_v44 = vld [vmem:[%s694_s18 + $0x240] sm:$0xff] }
  0x60   : > { %483 = vst [vmem:[%s717_s21 + $0x90] sm:$0xff] %v387_v57  ;;  %v412_v57 = vadd.f32 %v316_v37, %v831_v43  ;;  %v322_v43 = vld [vmem:[%s694_s18 + $0x188] sm:$0xff]  ;;  %v1340_v40 = vld [vmem:[#allocation17_spill] sm:$0xff] }
  0x61   : > { %484 = vst [vmem:[%s717_s21 + $0x98] sm:$0xff] %v388_v58  ;;  %v414_v58 = vadd.f32 %v318_v39, %v837_v45  ;;  %v324_v45 = vld [vmem:[%s694_s18 + $0x198] sm:$0xff]  ;;  %v1338_v37 = vld [vmem:[#allocation15_spill] sm:$0xff] }
  0x62   : > { %485 = vst [vmem:[%s717_s21 + $0xa0] sm:$0xff] %v389_v3  ;;  %v416_v3 = vadd.f32 %v320_v41, %v843_v47  ;;  %v326_v47 = vld [vmem:[%s694_s18 + $0x1a8] sm:$0xff]  ;;  %v343_v41 = vld [vmem:[%s694_s18 + $0x230] sm:$0xff] }
  0x63   : > { %486 = vst [vmem:[%s717_s21 + $0xa8] sm:$0xff] %v390_v59  ;;  %v418_v59 = vadd.f32 %v322_v43, %v849_v49  ;;  %v328_v49 = vld [vmem:[%s694_s18 + $0x1b8] sm:$0xff]  ;;  %v1342_v43 = vld [vmem:[#allocation19_spill] sm:$0xff] }
  0x64   : > { %487 = vst [vmem:[%s717_s21 + $0xb0] sm:$0xff] %v391_v4  ;;  %v420_v4 = vadd.f32 %v324_v45, %v855_v51  ;;  %v330_v51 = vld [vmem:[%s694_s18 + $0x1c8] sm:$0xff] }
  0x65   : > { %488 = vst [vmem:[%s717_s21 + $0xb8] sm:$0xff] %v392_v54  ;;  %v421_v54 = vadd.f32 %v325_v46, %v1325_v19  ;;  %v1344_v46 = vld [vmem:[#allocation21_spill] sm:$0xff] }
  0x66   : > { %489 = vst [vmem:[%s717_s21 + $0xc0] sm:$0xff] %v393_v5  ;;  %v422_v5 = vadd.f32 %v326_v47, %v1326_v20  ;;  %v347_v47 = vld [vmem:[%s694_s18 + $0x250] sm:$0xff]  ;;  %v348_v19 = vld [vmem:[%s694_s18 + $0x258] sm:$0xff]  ;;  %v349_v20 = vld [vmem:[%s694_s18 + $0x260] sm:$0xff] }
  0x67   : > { %490 = vst [vmem:[%s717_s21 + $0xc8] sm:$0xff] %v394_v56  ;;  %v423_v56 = vadd.f32 %v327_v48, %v1327_v21  ;;  %v350_v21 = vld [vmem:[%s694_s18 + $0x268] sm:$0xff] }
  0x68   : > { %491 = vst [vmem:[%s717_s21 + $0xd0] sm:$0xff] %v395_v6  ;;  %v424_v6 = vadd.f32 %v328_v49, %v1328_v22  ;;  %v351_v22 = vld [vmem:[%s694_s18 + $0x270] sm:$0xff] }
  0x69   : > { %492 = vst [vmem:[%s717_s21 + $0xd8] sm:$0xff] %v396_v52  ;;  %v1329_v52 = vld [vmem:[#allocation6_spill] sm:$0xff] }
  0x6a   : > { %493 = vst [vmem:[%s717_s21 + $0xe0] sm:$0xff] %v397_v7  ;;  %v425_v24 = vadd.f32 %v329_v50, %v1329_v52  ;;  %v332_v7 = vld [vmem:[%s694_s18 + $0x1d8] sm:$0xff] }
  0x6b   : > { %494 = vst [vmem:[%s717_s21 + $0xe8] sm:$0xff] %v398_v60  ;;  %v426_v60 = vadd.f32 %v330_v51, %v1330_v25  ;;  %v352_v52 = vld [vmem:[%s694_s18 + $0x278] sm:$0xff]  ;;  %v353_v25 = vld [vmem:[%s694_s18 + $0x280] sm:$0xff] }
  0x6c   : > { %495 = vst [vmem:[%s717_s21 + $0xf0] sm:$0xff] %v399_v8  ;;  %v1331_v8 = vld [vmem:[#allocation8_spill] sm:$0xff] }
  0x6d   : > { %496 = vst [vmem:[%s717_s21 + $0xf8] sm:$0xff] %v400_v61  ;;  %v427_v27 = vadd.f32 %v331_v23, %v1331_v8  ;;  %v334_v61 = vld [vmem:[%s694_s18 + $0x1e8] sm:$0xff] }
  0x6e   : > { %497 = vst [vmem:[%s717_s21 + $0x100] sm:$0xff] %v401_v9  ;;  %v428_v9 = vadd.f32 %v332_v7, %v1332_v28  ;;  %v354_v8 = vld [vmem:[%s694_s18 + $0x288] sm:$0xff]  ;;  %v355_v28 = vld [vmem:[%s694_s18 + $0x290] sm:$0xff] }
  0x6f   : > { %498 = vst [vmem:[%s717_s21 + $0x108] sm:$0xff] %v402_v62  ;;  %v1333_v62 = vld [vmem:[#allocation10_spill] sm:$0xff] }
  0x70   : > { %499 = vst [vmem:[%s717_s21 + $0x110] sm:$0xff] %v403_v10  ;;  %v429_v30 = vadd.f32 %v333_v26, %v1333_v62  ;;  %v336_v10 = vld [vmem:[%s694_s18 + $0x1f8] sm:$0xff] }
  0x71   : > { %500 = vst [vmem:[%s717_s21 + $0x118] sm:$0xff] %v404_v0  ;;  %v430_v0 = vadd.f32 %v334_v61, %v1334_v31  ;;  %v356_v62 = vld [vmem:[%s694_s18 + $0x298] sm:$0xff]  ;;  %v357_v31 = vld [vmem:[%s694_s18 + $0x2a0] sm:$0xff] }
  0x72   : > { %501 = vst [vmem:[%s717_s21 + $0x120] sm:$0xff] %v405_v11  ;;  %v1335_v11 = vld [vmem:[#allocation12_spill] sm:$0xff] }
  0x73   : > { %502 = vst [vmem:[%s717_s21 + $0x128] sm:$0xff] %v406_v1  ;;  %v431_v33 = vadd.f32 %v335_v29, %v1335_v11  ;;  %v338_v1 = vld [vmem:[%s694_s18 + $0x208] sm:$0xff] }
  0x74   : > { %503 = vst [vmem:[%s717_s21 + $0x130] sm:$0xff] %v407_v12  ;;  %v432_v12 = vadd.f32 %v336_v10, %v1336_v34  ;;  %v358_v11 = vld [vmem:[%s694_s18 + $0x2a8] sm:$0xff]  ;;  %v359_v34 = vld [vmem:[%s694_s18 + $0x2b0] sm:$0xff] }
  0x75   : > { %504 = vst [vmem:[%s717_s21 + $0x138] sm:$0xff] %v408_v2  ;;  %v1337_v2 = vld [vmem:[#allocation14_spill] sm:$0xff] }
  0x76   : > { %505 = vst [vmem:[%s717_s21 + $0x140] sm:$0xff] %v409_v13  ;;  %v433_v36 = vadd.f32 %v337_v32, %v1337_v2  ;;  %v340_v13 = vld [vmem:[%s694_s18 + $0x218] sm:$0xff] }
  0x77   : > { %506 = vst [vmem:[%s717_s21 + $0x148] sm:$0xff] %v410_v55  ;;  %v434_v55 = vadd.f32 %v338_v1, %v1338_v37  ;;  %v360_v2 = vld [vmem:[%s694_s18 + $0x2b8] sm:$0xff]  ;;  %v361_v37 = vld [vmem:[%s694_s18 + $0x2c0] sm:$0xff] }
  0x78   : > { %507 = vst [vmem:[%s717_s21 + $0x150] sm:$0xff] %v411_v14  ;;  %v1339_v14 = vld [vmem:[#allocation16_spill] sm:$0xff] }
  0x79   : > { %508 = vst [vmem:[%s717_s21 + $0x158] sm:$0xff] %v412_v57  ;;  %v435_v39 = vadd.f32 %v339_v35, %v1339_v14  ;;  %v342_v57 = vld [vmem:[%s694_s18 + $0x228] sm:$0xff] }
  0x7a   : > { %509 = vst [vmem:[%s717_s21 + $0x160] sm:$0xff] %v413_v15  ;;  %v436_v15 = vadd.f32 %v340_v13, %v1340_v40  ;;  %v362_v14 = vld [vmem:[%s694_s18 + $0x2c8] sm:$0xff]  ;;  %v363_v40 = vld [vmem:[%s694_s18 + $0x2d0] sm:$0xff] }
  0x7b   : > { %510 = vst [vmem:[%s717_s21 + $0x168] sm:$0xff] %v414_v58  ;;  %v1341_v58 = vld [vmem:[#allocation18_spill] sm:$0xff] }
  0x7c   : > { %511 = vst [vmem:[%s717_s21 + $0x170] sm:$0xff] %v415_v16  ;;  %v437_v42 = vadd.f32 %v341_v38, %v1341_v58  ;;  %v344_v16 = vld [vmem:[%s694_s18 + $0x238] sm:$0xff] }
  0x7d   : > { %512 = vst [vmem:[%s717_s21 + $0x178] sm:$0xff] %v416_v3  ;;  %v438_v3 = vadd.f32 %v342_v57, %v1342_v43  ;;  %v364_v58 = vld [vmem:[%s694_s18 + $0x2d8] sm:$0xff]  ;;  %v365_v43 = vld [vmem:[%s694_s18 + $0x2e0] sm:$0xff] }
  0x7e   : > { %513 = vst [vmem:[%s717_s21 + $0x180] sm:$0xff] %v417_v17  ;;  %v1343_v17 = vld [vmem:[#allocation20_spill] sm:$0xff] }
  0x7f   : > { %514 = vst [vmem:[%s717_s21 + $0x188] sm:$0xff] %v418_v59  ;;  %v439_v45 = vadd.f32 %v343_v41, %v1343_v17  ;;  %v346_v59 = vld [vmem:[%s694_s18 + $0x248] sm:$0xff] }
  0x80   : > { %515 = vst [vmem:[%s717_s21 + $0x190] sm:$0xff] %v419_v18  ;;  %v440_v18 = vadd.f32 %v344_v16, %v1344_v46  ;;  %v366_v17 = vld [vmem:[%s694_s18 + $0x2e8] sm:$0xff]  ;;  %v367_v46 = vld [vmem:[%s694_s18 + $0x2f0] sm:$0xff] }
  0x81   : > { %516 = vst [vmem:[%s717_s21 + $0x198] sm:$0xff] %v420_v4  ;;  %v1345_v4 = vld [vmem:[#allocation22_spill] sm:$0xff] }
  0x82   : > { %517 = vst [vmem:[%s717_s21 + $0x1a0] sm:$0xff] %v421_v54  ;;  %v441_v48 = vadd.f32 %v345_v44, %v1345_v4  ;;  %v1346_v54 = vld [vmem:[#allocation23_spill] sm:$0xff]  ;;  %v368_v4 = vld [vmem:[%s694_s18 + $0x2f8] sm:$0xff] }
  0x83   : > { %518 = vst [vmem:[%s717_s21 + $0x1a8] sm:$0xff] %v422_v5  ;;  %v442_v49 = vadd.f32 %v346_v59, %v1346_v54  ;;  %v1347_v5 = vld [vmem:[#allocation24_spill] sm:$0xff]  ;;  %v463_v54 = vadd.f32 %v367_v46, %v993_v63 }
  0x84   : > { %519 = vst [vmem:[%s717_s21 + $0x1b0] sm:$0xff] %v423_v56  ;;  %v443_v50 = vadd.f32 %v347_v47, %v1347_v5  ;;  %v1348_v56 = vld [vmem:[#allocation25_spill] sm:$0xff] }
  0x85   : > { %520 = vst [vmem:[%s717_s21 + $0x1b8] sm:$0xff] %v424_v6  ;;  %v444_v51 = vadd.f32 %v348_v19, %v1348_v56  ;;  %v1349_v6 = vld [vmem:[#allocation26_spill] sm:$0xff] }
  0x86   : > { %521 = vst [vmem:[%s717_s21 + $0x1c0] sm:$0xff] %v425_v24  ;;  %v445_v23 = vadd.f32 %v349_v20, %v1349_v6  ;;  %v1350_v24 = vld [vmem:[#allocation27_spill] sm:$0xff] }
  0x87   : > { %522 = vst [vmem:[%s717_s21 + $0x1c8] sm:$0xff] %v426_v60  ;;  %v446_v7 = vadd.f32 %v350_v21, %v1350_v24  ;;  %v1351_v60 = vld [vmem:[#allocation28_spill] sm:$0xff] }
  0x88   : > { %523 = vst [vmem:[%s717_s21 + $0x1d0] sm:$0xff] %v427_v27  ;;  %v447_v26 = vadd.f32 %v351_v22, %v1351_v60  ;;  %v1352_v27 = vld [vmem:[#allocation29_spill] sm:$0xff] }
  0x89   : > { %524 = vst [vmem:[%s717_s21 + $0x1d8] sm:$0xff] %v428_v9  ;;  %v448_v61 = vadd.f32 %v352_v52, %v1352_v27  ;;  %v1353_v9 = vld [vmem:[#allocation30_spill] sm:$0xff] }
  0x8a   : > { %525 = vst [vmem:[%s717_s21 + $0x1e0] sm:$0xff] %v429_v30  ;;  %v449_v29 = vadd.f32 %v353_v25, %v1353_v9  ;;  %v1354_v30 = vld [vmem:[#allocation31_spill] sm:$0xff] }
  0x8b   : > { %526 = vst [vmem:[%s717_s21 + $0x1e8] sm:$0xff] %v430_v0  ;;  %v450_v10 = vadd.f32 %v354_v8, %v1354_v30  ;;  %v1355_v0 = vld [vmem:[#allocation32_spill] sm:$0xff] }
  0x8c   : > { %527 = vst [vmem:[%s717_s21 + $0x1f0] sm:$0xff] %v431_v33  ;;  %v451_v32 = vadd.f32 %v355_v28, %v1355_v0  ;;  %v1356_v33 = vld [vmem:[#allocation33_spill] sm:$0xff] }
  0x8d   : > { %528 = vst [vmem:[%s717_s21 + $0x1f8] sm:$0xff] %v432_v12  ;;  %v452_v1 = vadd.f32 %v356_v62, %v1356_v33  ;;  %v1357_v12 = vld [vmem:[#allocation34_spill] sm:$0xff] }
  0x8e   : > { %529 = vst [vmem:[%s717_s21 + $0x200] sm:$0xff] %v433_v36  ;;  %v453_v35 = vadd.f32 %v357_v31, %v1357_v12  ;;  %v1358_v36 = vld [vmem:[#allocation35_spill] sm:$0xff] }
  0x8f   : > { %530 = vst [vmem:[%s717_s21 + $0x208] sm:$0xff] %v434_v55  ;;  %v454_v13 = vadd.f32 %v358_v11, %v1358_v36  ;;  %v1359_v55 = vld [vmem:[#allocation36_spill] sm:$0xff] }
  0x90   : > { %531 = vst [vmem:[%s717_s21 + $0x210] sm:$0xff] %v435_v39  ;;  %v455_v38 = vadd.f32 %v359_v34, %v1359_v55  ;;  %v1360_v39 = vld [vmem:[#allocation37_spill] sm:$0xff] }
  0x91   : > { %532 = vst [vmem:[%s717_s21 + $0x218] sm:$0xff] %v436_v15  ;;  %v456_v57 = vadd.f32 %v360_v2, %v1360_v39  ;;  %v1361_v15 = vld [vmem:[#allocation38_spill] sm:$0xff] }
  0x92   : > { %533 = vst [vmem:[%s717_s21 + $0x220] sm:$0xff] %v437_v42  ;;  %v457_v41 = vadd.f32 %v361_v37, %v1361_v15  ;;  %v1362_v42 = vld [vmem:[#allocation39_spill] sm:$0xff] }
  0x93   : > { %534 = vst [vmem:[%s717_s21 + $0x228] sm:$0xff] %v438_v3  ;;  %v458_v16 = vadd.f32 %v362_v14, %v1362_v42  ;;  %v1363_v3 = vld [vmem:[#allocation40_spill] sm:$0xff] }
  0x94   : > { %535 = vst [vmem:[%s717_s21 + $0x230] sm:$0xff] %v439_v45  ;;  %v459_v44 = vadd.f32 %v363_v40, %v1363_v3  ;;  %v1364_v45 = vld [vmem:[#allocation41_spill] sm:$0xff] }
  0x95   : > { %536 = vst [vmem:[%s717_s21 + $0x238] sm:$0xff] %v440_v18  ;;  %v460_v59 = vadd.f32 %v364_v58, %v1364_v45  ;;  %v1365_v18 = vld [vmem:[#allocation42_spill] sm:$0xff] }
  0x96   : > { %537 = vst [vmem:[%s717_s21 + $0x240] sm:$0xff] %v441_v48  ;;  %v461_v47 = vadd.f32 %v365_v43, %v1365_v18  ;;  %v1366_v48 = vld [vmem:[#allocation43_spill] sm:$0xff] }
  0x97   : > { %538 = vst [vmem:[%s717_s21 + $0x248] sm:$0xff] %v442_v49  ;;  %v462_v19 = vadd.f32 %v366_v17, %v1366_v48  ;;  %v464_v49 = vadd.f32 %v368_v4, %v996_v53 }
  0x98   : > { %539 = vst [vmem:[%s717_s21 + $0x250] sm:$0xff] %v443_v50 }
  0x99   : > { %540 = vst [vmem:[%s717_s21 + $0x258] sm:$0xff] %v444_v51 }
  0x9a   : > { %541 = vst [vmem:[%s717_s21 + $0x260] sm:$0xff] %v445_v23 }
  0x9b   : > { %542 = vst [vmem:[%s717_s21 + $0x268] sm:$0xff] %v446_v7 }
  0x9c   : > { %543 = vst [vmem:[%s717_s21 + $0x270] sm:$0xff] %v447_v26 }
  0x9d   : > { %544 = vst [vmem:[%s717_s21 + $0x278] sm:$0xff] %v448_v61 }
  0x9e   : > { %545 = vst [vmem:[%s717_s21 + $0x280] sm:$0xff] %v449_v29 }
  0x9f   : > { %546 = vst [vmem:[%s717_s21 + $0x288] sm:$0xff] %v450_v10 }
  0xa0   : > { %547 = vst [vmem:[%s717_s21 + $0x290] sm:$0xff] %v451_v32 }
  0xa1   : > { %548 = vst [vmem:[%s717_s21 + $0x298] sm:$0xff] %v452_v1 }
  0xa2   : > { %549 = vst [vmem:[%s717_s21 + $0x2a0] sm:$0xff] %v453_v35 }
  0xa3   : > { %550 = vst [vmem:[%s717_s21 + $0x2a8] sm:$0xff] %v454_v13 }
  0xa4   : > { %551 = vst [vmem:[%s717_s21 + $0x2b0] sm:$0xff] %v455_v38 }
  0xa5   : > { %552 = vst [vmem:[%s717_s21 + $0x2b8] sm:$0xff] %v456_v57 }
  0xa6   : > { %553 = vst [vmem:[%s717_s21 + $0x2c0] sm:$0xff] %v457_v41 }
  0xa7   : > { %554 = vst [vmem:[%s717_s21 + $0x2c8] sm:$0xff] %v458_v16 }
  0xa8   : > { %555 = vst [vmem:[%s717_s21 + $0x2d0] sm:$0xff] %v459_v44 }
  0xa9   : > { %556 = vst [vmem:[%s717_s21 + $0x2d8] sm:$0xff] %v460_v59 }
  0xaa   : > { %557 = vst [vmem:[%s717_s21 + $0x2e0] sm:$0xff] %v461_v47 }
  0xab   : > { %558 = vst [vmem:[%s717_s21 + $0x2e8] sm:$0xff] %v462_v19 }
  0xac   : > { %559 = vst [vmem:[%s717_s21 + $0x2f0] sm:$0xff] %v463_v54 }
  0xad   : > { %560 = vst [vmem:[%s717_s21 + $0x2f8] sm:$0xff] %v464_v49 }
  0xae PF: > { %s12_s9 = sadd.s32 1, %s661_s9  }
  0xaf   : > { %p9_p4 = scmp.ge.s32.totalorder %s12_s9, 4  }
  0xb1   :  { %11 = sbr.rel (!%p9_p4) target bundleno = 1 (0x1), region = 61 }

</bundles_post_ra>
